<compile_context>
chip_gen: v6e
topology: v6e:2x2x1
jax: 0.10.0
libtpu: 0.0.40
codegen_flags: <defaults>
</compile_context>

<pallas_src>
import functools
import math

import jax
import jax.numpy as jnp
from jax.experimental import pallas as pl
from jax.experimental.pallas import tpu as pltpu


# ---------------------------------------------------------------------------
# Kernels: one batch element per grid step.
# ---------------------------------------------------------------------------
def _attention_core_kernel(attn_ref, v_ref, out_ref, *, inv_sqrt_dk):
    # attn_ref: (1, S, S)  v_ref: (1, S, Dv)  out_ref: (1, S, Dv)
    a = attn_ref[0] * inv_sqrt_dk                           # scale by 1/sqrt(dk)
    a = a - jnp.max(a, axis=-1, keepdims=True)              # numerically stable
    p = jnp.exp(a)
    denom = jnp.sum(p, axis=-1, keepdims=True)
    p = p * pl.reciprocal(denom, approx=True)               # EUP vrcp (free slot)
    out_ref[0] = jnp.dot(p, v_ref[0],
                         preferred_element_type=jnp.float32).astype(out_ref.dtype)


def _attention_core_masked_kernel(attn_ref, mask_ref, v_ref, out_ref, *,
                                  inv_sqrt_dk):
    a = attn_ref[0] * inv_sqrt_dk + mask_ref[0]
    a = a - jnp.max(a, axis=-1, keepdims=True)
    p = jnp.exp(a)
    denom = jnp.sum(p, axis=-1, keepdims=True)
    p = p * pl.reciprocal(denom, approx=True)
    out_ref[0] = jnp.dot(p, v_ref[0],
                         preferred_element_type=jnp.float32).astype(out_ref.dtype)


# ---------------------------------------------------------------------------
# Wrapper (mirrors AttentionCore.forward).
# ---------------------------------------------------------------------------
def attention_core(matrix_v, attn_matrix, dim_k, mask=None):
    B, S, Dv = matrix_v.shape
    assert attn_matrix.shape == (B, S, S), "Attn_Matrix must be (B, S, S)"
    inv_sqrt_dk = 1.0 / math.sqrt(float(dim_k))

    attn_spec = pl.BlockSpec((1, S, S), lambda b: (b, 0, 0))
    v_spec = pl.BlockSpec((1, S, Dv), lambda b: (b, 0, 0))
    out_spec = pl.BlockSpec((1, S, Dv), lambda b: (b, 0, 0))

    if mask is None:
        kernel = functools.partial(_attention_core_kernel,
                                   inv_sqrt_dk=inv_sqrt_dk)
        in_specs = [attn_spec, v_spec]
        args = (attn_matrix, matrix_v)
    else:
        mask = jnp.broadcast_to(mask, (B, S, S)).astype(attn_matrix.dtype)
        kernel = functools.partial(_attention_core_masked_kernel,
                                   inv_sqrt_dk=inv_sqrt_dk)
        in_specs = [attn_spec,
                    pl.BlockSpec((1, S, S), lambda b: (b, 0, 0)),
                    v_spec]
        args = (attn_matrix, mask, matrix_v)

    return pl.pallas_call(
        kernel,
        out_shape=jax.ShapeDtypeStruct((B, S, Dv), matrix_v.dtype),
        grid=(B,),
        in_specs=in_specs,
        out_specs=out_spec,
        compiler_params=pltpu.CompilerParams(
            dimension_semantics=("parallel",)),
    )(*args)


# ---------------------------------------------------------------------------
# Pure-JAX reference (mirrors the PyTorch forward) for a correctness check.
# ---------------------------------------------------------------------------
def reference_attention_core(matrix_v, attn_matrix, dim_k, mask=None):
    core = attn_matrix / jnp.sqrt(jnp.float32(dim_k))
    if mask is not None:
        core = core + mask
    core = jax.nn.softmax(core, axis=-1)
    return jnp.einsum("bqs,bsv->bqv", core, matrix_v,
                      precision=jax.lax.Precision.HIGHEST)


if __name__ == "__main__":
    B, S, Dv = 2, 128, 128     # lane-dense (multiples of 128) but still tiny
    dim_k = 64

    key = jax.random.PRNGKey(0)
    k_v, k_a = jax.random.split(key)
    matrix_v = jax.random.normal(k_v, (B, S, Dv), dtype=jnp.float32)
    attn_matrix = jax.random.normal(k_a, (B, S, S), dtype=jnp.float32)

    # --- default path (mask=None, i.e. +0 like the PyTorch module) ---
    out = attention_core(matrix_v, attn_matrix, dim_k)
    out = jax.block_until_ready(out)
    ref = reference_attention_core(matrix_v, attn_matrix, dim_k)
    assert out.shape == (B, S, Dv)
    assert jnp.allclose(out, ref, atol=2e-3, rtol=2e-3), "mismatch (no mask)"

    # --- explicit additive mask path (e.g. causal mask) ---
    causal = jnp.where(
        jnp.arange(S)[:, None] >= jnp.arange(S)[None, :], 0.0, -1e9
    ).astype(jnp.float32)                                    # (S, S), broadcast over B
    out_m = attention_core(matrix_v, attn_matrix, dim_k, mask=causal)
    out_m = jax.block_until_ready(out_m)
    ref_m = reference_attention_core(matrix_v, attn_matrix, dim_k, mask=causal)
    assert jnp.allclose(out_m, ref_m, atol=2e-3, rtol=2e-3), "mismatch (mask)"

    print("KERNEL_OK")
</pallas_src>

<mosaic_0001>
module attributes {stable_mosaic.version = 11 : i64} {
  func.func @_attention_core_kernel(%arg0: i32, %arg1: memref<1x128x128xf32, #tpu.memory_space<vmem>>, %arg2: memref<1x128x128xf32, #tpu.memory_space<vmem>>, %arg3: memref<1x128x128xf32, #tpu.memory_space<vmem>>) attributes {dimension_semantics = [#tpu.dimension_semantics<parallel>], iteration_bounds = array<i64: 2>, scalar_prefetch = 0 : i64, scratch_operands = 0 : i64, tpu.core_type = #tpu.core_type<tc>, window_params = [{transform_indices = @transform_0, window_bounds = array<i64: 1, 128, 128>}, {transform_indices = @transform_1, window_bounds = array<i64: 1, 128, 128>}, {transform_indices = @transform_2, window_bounds = array<i64: 1, 128, 128>}]} {
    %c0 = arith.constant 0 : index
    %c0_0 = arith.constant 0 : index
    %c0_1 = arith.constant 0 : index
    %0 = vector.load %arg1[%c0, %c0_0, %c0_1] : memref<1x128x128xf32, #tpu.memory_space<vmem>>, vector<1x128x128xf32>
    %1 = vector.shape_cast %0 : vector<1x128x128xf32> to vector<128x128xf32>
    %cst = arith.constant 1.250000e-01 : f32
    %2 = vector.broadcast %cst : f32 to vector<128x128xf32>
    %3 = arith.mulf %1, %2 : vector<128x128xf32>
    %cst_2 = arith.constant dense<0xFF800000> : vector<128xf32>
    %4 = vector.multi_reduction <maximumf>, %3, %cst_2 [1] : vector<128x128xf32> to vector<128xf32>
    %5 = vector.shape_cast %4 : vector<128xf32> to vector<128x1xf32>
    %6 = vector.broadcast %5 : vector<128x1xf32> to vector<128x128xf32>
    %7 = arith.subf %3, %6 : vector<128x128xf32>
    %8 = math.exp %7 : vector<128x128xf32>
    %cst_3 = arith.constant dense<0.000000e+00> : vector<128xf32>
    %9 = vector.multi_reduction <add>, %8, %cst_3 [1] : vector<128x128xf32> to vector<128xf32>
    %10 = vector.shape_cast %9 : vector<128xf32> to vector<128x1xf32>
    %11 = tpu.reciprocal %10 {approx = true} : vector<128x1xf32> -> vector<128x1xf32>
    %12 = vector.broadcast %11 : vector<128x1xf32> to vector<128x128xf32>
    %13 = arith.mulf %8, %12 : vector<128x128xf32>
    %c0_4 = arith.constant 0 : index
    %c0_5 = arith.constant 0 : index
    %c0_6 = arith.constant 0 : index
    %14 = vector.load %arg2[%c0_4, %c0_5, %c0_6] : memref<1x128x128xf32, #tpu.memory_space<vmem>>, vector<1x128x128xf32>
    %15 = vector.shape_cast %14 : vector<1x128x128xf32> to vector<128x128xf32>
    %cst_7 = arith.constant dense<0.000000e+00> : vector<128x128xf32>
    %16 = tpu.matmul %13, %15, %cst_7 {dimension_numbers = #tpu.dot_dimension_numbers<[1], [0], [0], [1], [0, 0, 1, 1], [], []>} : vector<128x128xf32>, vector<128x128xf32>, vector<128x128xf32> -> vector<128x128xf32>
    %c0_8 = arith.constant 0 : index
    %c0_9 = arith.constant 0 : index
    %c0_10 = arith.constant 0 : index
    %17 = vector.load %arg3[%c0_8, %c0_9, %c0_10] : memref<1x128x128xf32, #tpu.memory_space<vmem>>, vector<1x128x128xf32>
    %18 = vector.shape_cast %17 : vector<1x128x128xf32> to vector<128x128xf32>
    %19 = vector.shape_cast %16 : vector<128x128xf32> to vector<1x128x128xf32>
    tpu.vector_store %arg3[%c0_8, %c0_9, %c0_10], %19 {strides = array<i32>} : memref<1x128x128xf32, #tpu.memory_space<vmem>>, vector<1x128x128xf32>,
    return
  }
  func.func @transform_0(%arg0: i32) -> (i32, i32, i32) {
    %c0_i32 = arith.constant 0 : i32
    %c0_i32_0 = arith.constant 0 : i32
    %c0_i32_1 = arith.constant 0 : i32
    return %arg0, %c0_i32, %c0_i32_0 : i32, i32, i32
  }
  func.func @transform_1(%arg0: i32) -> (i32, i32, i32) {
    %c0_i32 = arith.constant 0 : i32
    %c0_i32_0 = arith.constant 0 : i32
    %c0_i32_1 = arith.constant 0 : i32
    return %arg0, %c0_i32, %c0_i32_0 : i32, i32, i32
  }
  func.func @transform_2(%arg0: i32) -> (i32, i32, i32) {
    %c0_i32 = arith.constant 0 : i32
    %c0_i32_0 = arith.constant 0 : i32
    %c0_i32_1 = arith.constant 0 : i32
    return %arg0, %c0_i32, %c0_i32_0 : i32, i32, i32
  }
}

</mosaic_0001>

<bundles_post_ra>
// kernel: tpu_custom_call.1
= control target key start
LH: loop header
LB: loop body
LE: loop exit
PB: predicated region body
PF: predicated region fallthrough
CT: control target
= control target key end

     0   :  { %7 = vsyncpa [#allocation3], 0  ;;  %s1479_s0 = inlined_call_operand.hbm [shape: f32[2,128,128], index: 0, kind: input, shape index: {}]   ;;  %s1480_s1 = inlined_call_operand.hbm [shape: f32[2,128,128], index: 1, kind: input, shape index: {}]   ;;  %s1481_s2 = inlined_call_operand.hbm [shape: f32[2,128,128], index: 2, kind: output, shape index: {}]  }
   0x1   :  { %9 = vsyncpa [#allocation3 + $0x1], 0 }
   0x2   :  { %10 = vsyncpa [#allocation6], 0 }
   0x3   :  { %12 = vsyncpa [#allocation6 + $0x1], 0 }
   0x4   :  { %13 = vsyncpa [#allocation4], 0 }
   0x5   :  { %15 = vsyncpa [#allocation4 + $0x1], 0  ;;  %s1073_s9 = smov 0   ;;  %s1075_s10 = smov 0  }
   0x6   :  { %s1077_s11 = smov 0   ;;  %s1079_s12 = smov 0  }
   0x7 LB: > { %s1094_s13 = sadd.s32 4294967295, %s1049_s12   ;;  %s665_s14 = sadd.s32 4294967294, %s1049_s12   ;;  %s1049_s12 = sphi %s1079_s12, %s1497_s12   ;;  %s1045_s11 = sphi %s1077_s11, %s1496_s11   ;;  %s1041_s10 = sphi %s1075_s10, %s1495_s10   ;;  %s1037_s9 = sphi %s1073_s9, %s1494_s9  }
   0x8   : > { %s1098_s15 = sadd.s32 1, %s1049_s12   ;;  %s28_s16 = sadd.s32 1, %s1045_s11 }
   0x9   : > { %s25_s17 = ssub.s32 %s1049_s12, %s1098_s15  ;;  %p35_p0 = scmp.ne.s32.totalorder %s1045_s11, %s1041_s10 }
   0xa   : > { %p26_p1 = scmp.eq.s32.totalorder %s25_s17, 0  ;;  %p36_p2 = scmp.eq.s32.totalorder %s1049_s12, 0 }
   0xb   : > { %p41_p3 = scmp.ne.s32.totalorder %s1041_s10, %s1037_s9  ;;  %p42_p4 = scmp.eq.s32.totalorder %s1094_s13, 0 }
   0xc   : > { %s1110_s18 = scalar_select %p26_p1, %s1045_s11, %s28_s16  }
   0xd   : > { %p1112_p5 = por %p36_p2, %p35_p0  ;;  %p1116_p6 = por %p42_p4, %p41_p3 }
   0xe   : > { %p91_p7 = scmp.eq.s32.totalorder %s1094_s13, 1  ;;  %p97_p8 = scmp.eq.s32.totalorder %s665_s14, 1 }
   0xf   : > { %s1485_s20 = scalar_select %p1116_p6, 1, 0 }
  0x10   : > { %p823_p10 = scmp.lt.s32.totalorder %s1049_s12, 2  ;;  %p1123_p11 = por %p91_p7, %p35_p0 }
  0x11   : > { %p1127_p12 = por %p97_p8, %p41_p3  ;;  %s1132_s23 = sand.u32 1, %s1045_s11  }
  0x12   : > { %s1486_s21 = scalar_select %p1123_p11, 1, 0 }
  0x13   : > { %s1487_s22 = scalar_select %p1127_p12, 1, 0 }
  0x14   : > { %s683_s24 = sshll.u32 %s1049_s12, 11  ;;  %s668_s25 = sshll.u32 %s1132_s23, 7 }
  0x15   : > { %s1141_s28 = scalar_lea.hbm %s1479_s0, %s683_s24  ;;  %s121_s29 = scalar_lea.vmem [#allocation2], %s668_s25 }
  0x16   : > { %s128_s30 = sshll.u32 %s121_s29, 4  ;;  %p1147_p13 = pnand %p823_p10, %p1112_p5  ;;  %s1151_s30 = int_to_ptr.vmem [resolvable:$true] %s128_s30 }
  0x17   : > { %s118_s4 = scalar_lea.sflag [#allocation3], %s1132_s23  ;;  %s925_s5 = scalar_lea.hbm %s1141_s28, 2048 }
  0x18   : > { %p926_p0 = scmp.ne.s32.totalorder %s1141_s28, %s925_s5  ;;  %p927_p1 = pneg %p1147_p13 }
  0x19   : > { %s930_s8 = scalar_lea.hbm %s1479_s0, 4096  ;;  %p931_p4 = scmp.lt.s32.totalorder %s1141_s28, %s1479_s0 }
  0x1a   : > { %p928_p2 = pnand %p927_p1, %p926_p0  ;;  %p932_p5 = scmp.lt.s32.totalorder %s930_s8, %s925_s5 }
  0x1c   : > { %p929_p3 = pneg %p928_p2  ;;  %p933_p7 = por %p932_p5, %p931_p4 }
  0x1e   : > { %p934_p8 = pnand %p933_p7, %p929_p3 }
  0x20   : > { %937 = shalt.err (!%p934_p8)
}
  0x21   : > { %s938_s17 = scalar_lea.vmem %s1151_s30, 2048  ;;  %s1051_s19 = smov [#allocation2]  }
  0x22   : > { %p939_p10 = scmp.ne.s32.totalorder %s1151_s30, %s938_s17  ;;  %s943_s26 = sshll.u32 %s1051_s19, 4  ;;  %s944_s26 = int_to_ptr.vmem [resolvable:$false] %s943_s26 }
  0x23   : > { %s945_s27 = scalar_lea.vmem %s944_s26, 4096  ;;  %p946_p9 = scmp.lt.s32.totalorder %s1151_s30, %s944_s26 }
  0x24   : > { %p941_p0 = pnand %p939_p10, %p927_p1  ;;  %p947_p12 = scmp.lt.s32.totalorder %s945_s27, %s938_s17 }
  0x26   : > { %p942_p2 = pneg %p941_p0  ;;  %p948_p11 = por %p947_p12, %p946_p9 }
  0x28   : > { %p949_p4 = pnand %p948_p11, %p942_p2 }
  0x2a   : > { %952 = shalt.err (!%p949_p4)
}
  0x2b   : > { %s1052_s29 = smov 128   ;;  %s1053_s5 = smov 8  }
  0x2c   : > { %815 = dma.hbm_to_vmem [thread:$0]  (!%p1147_p13), %s1141_s28, 2048, %s1151_s30, %s118_s4, %s1052_s29, %s1052_s29, %s1053_s5  }
  0x2d   : > { %p674_p9 = scmp.ge.s32.totalorder %s1049_s12, 1  ;;  %p157_p11 = scmp.lt.s32.totalorder %s1049_s12, 3 }
  0x2e   : > { %s1194_s14 = scalar_lea.hbm %s1480_s1, %s683_s24  ;;  %s142_s16 = scalar_lea.vmem [#allocation5], %s668_s25 }
  0x2f   : > { %p1185_p12 = pnand %p674_p9, %p157_p11  ;;  %s149_s17 = sshll.u32 %s142_s16, 4  ;;  %s1198_s17 = int_to_ptr.vmem [resolvable:$true] %s149_s17 }
  0x30   : > { %s139_s28 = scalar_lea.sflag [#allocation6], %s1132_s23  ;;  %s953_s30 = scalar_lea.hbm %s1194_s14, 2048 }
  0x31   : > { %p954_p3 = scmp.ne.s32.totalorder %s1194_s14, %s953_s30  ;;  %s958_s24 = scalar_lea.hbm %s1480_s1, 4096 }
  0x32   : > { %p959_p8 = scmp.lt.s32.totalorder %s1194_s14, %s1480_s1  ;;  %p960_p10 = scmp.lt.s32.totalorder %s958_s24, %s953_s30 }
  0x33   : > { %p956_p5 = pnand %p954_p3, %p927_p1 }
  0x34   : > { %p961_p0 = por %p960_p10, %p959_p8 }
  0x35   : > { %p957_p7 = pneg %p956_p5 }
  0x37   : > { %p962_p2 = pnand %p961_p0, %p957_p7 }
  0x39   : > { %965 = shalt.err (!%p962_p2)
}
  0x3a   : > { %s966_s23 = scalar_lea.vmem %s1198_s17, 2048  ;;  %s1054_s25 = smov [#allocation5]  }
  0x3b   : > { %p967_p4 = scmp.ne.s32.totalorder %s1198_s17, %s966_s23  ;;  %s971_s7 = sshll.u32 %s1054_s25, 4  ;;  %s972_s7 = int_to_ptr.vmem [resolvable:$false] %s971_s7 }
  0x3c   : > { %s973_s8 = scalar_lea.vmem %s972_s7, 4096  ;;  %p974_p3 = scmp.lt.s32.totalorder %s1198_s17, %s972_s7 }
  0x3d   : > { %p969_p9 = pnand %p967_p4, %p927_p1  ;;  %p975_p5 = scmp.lt.s32.totalorder %s973_s8, %s966_s23 }
  0x3f   : > { %p970_p11 = pneg %p969_p9  ;;  %p976_p6 = por %p975_p5, %p974_p3 }
  0x41   : > { %p977_p8 = pnand %p976_p6, %p970_p11 }
  0x43   : > { %980 = shalt.err (!%p977_p8)
}
  0x44   : > { %818 = dma.hbm_to_vmem [thread:$0]  (!%p1147_p13), %s1194_s14, 2048, %s1198_s17, %s139_s28, %s1052_s29, %s1052_s29, %s1053_s5  }
  0x45   : > { %161 = sbr.rel (%p1185_p12) target bundleno = 631 (0x277), region = 28  ;;  %s1229_s16 = sand.u32 (!%p1185_p12), 1, %s1041_s10  }
  0x46   : > { %s1232_s30 = sshll.u32 (!%p1185_p12), %s1229_s16, 7  ;;  %s164_s4 = scalar_lea.sflag (!%p1185_p12), [#allocation3], %s1229_s16 }
  0x47   : > { %s1236_s3 = scalar_lea.vmem (!%p1185_p12), [#allocation2], %s1232_s30  ;;  %p1490_p6 = scmp.ne.s32.totalorder (!%p1185_p12), %s1485_s20, 0 }
  0x4a   : > { %1024 = dma.done.wait (%p1490_p6), %s164_s4, 2048  }
  0x4b   : > { %1026 = vsyncadd (%p1490_p6), %s164_s4, 4294965248  ;;  %s173_s29 = scalar_lea.sflag [#allocation6], %s1229_s16  ;;  %s1244_s5 = scalar_lea.vmem [#allocation5], %s1232_s30 }
  0x4c   : > { %1028 = dma.done.wait (%p1490_p6), %s173_s29, 2048  }
  0x4d   : > { %1030 = vsyncadd (%p1490_p6), %s173_s29, 4294965248  ;;  %v202_v0 = vld [vmem:[%s1236_s3] sm:$0xff]  ;;  %v203_v1 = vld [vmem:[%s1236_s3 + $0x8] sm:$0xff]  ;;  %s1411_s20 = scalar_lea.vmem [#allocation7], %s1232_s30  ;;  %s685_s6 = sshll.u32 %s1094_s13, 11 }
  0x4e   : > { %v210_v2 = vld [vmem:[%s1236_s3 + $0x40] sm:$0xff]  ;;  %v1253_v3 = vmul.f32 0.125, %v202_v0  ;;  %v1255_v4 = vmul.f32 0.125, %v203_v1  ;;  %v211_v5 = vld [vmem:[%s1236_s3 + $0x48] sm:$0xff]  ;;  %v204_v8 = vld [vmem:[%s1236_s3 + $0x10] sm:$0xff]  ;;  %s569_s14 = sshll.u32 %s1411_s20, 4  ;;  %s1432_s19 = scalar_lea.hbm %s1481_s2, %s685_s6  ;;  %s1434_s14 = int_to_ptr.vmem [resolvable:$true] %s569_s14 }
  0x4f   : > { %v1260_v6 = vmul.f32 0.125, %v210_v2  ;;  %v1262_v7 = vmul.f32 0.125, %v211_v5  ;;  %v212_v9 = vld [vmem:[%s1236_s3 + $0x50] sm:$0xff]  ;;  %v1268_v10 = vmul.f32 0.125, %v204_v8  ;;  %v205_v12 = vld [vmem:[%s1236_s3 + $0x18] sm:$0xff]  ;;  %v206_v16 = vld [vmem:[%s1236_s3 + $0x20] sm:$0xff] }
  0x50   : > { %234 = vmax.xlane.f32.xlu0 %v1253_v3  ;;  %236 = vmax.xlane.f32.xlu1 %v1255_v4  ;;  %v1270_v11 = vmul.f32 0.125, %v212_v9  ;;  %v213_v13 = vld [vmem:[%s1236_s3 + $0x58] sm:$0xff]  ;;  %v1276_v14 = vmul.f32 0.125, %v205_v12  ;;  %v214_v17 = vld [vmem:[%s1236_s3 + $0x60] sm:$0xff]  ;;  %v1284_v18 = vmul.f32 0.125, %v206_v16  ;;  %v207_v20 = vld [vmem:[%s1236_s3 + $0x28] sm:$0xff] }
  0x51   : > { %v1278_v15 = vmul.f32 0.125, %v213_v13  ;;  %v1286_v19 = vmul.f32 0.125, %v214_v17  ;;  %v215_v21 = vld [vmem:[%s1236_s3 + $0x68] sm:$0xff]  ;;  %v1292_v22 = vmul.f32 0.125, %v207_v20  ;;  %v208_v24 = vld [vmem:[%s1236_s3 + $0x30] sm:$0xff]  ;;  %v209_v28 = vld [vmem:[%s1236_s3 + $0x38] sm:$0xff] }
  0x52   : > { %v1294_v23 = vmul.f32 0.125, %v215_v21  ;;  %v216_v25 = vld [vmem:[%s1236_s3 + $0x70] sm:$0xff]  ;;  %v1300_v26 = vmul.f32 0.125, %v208_v24  ;;  %v217_v29 = vld [vmem:[%s1236_s3 + $0x78] sm:$0xff]  ;;  %v1308_v30 = vmul.f32 0.125, %v209_v28  ;;  %v391_v34 = vld [vmem:[%s1244_s5 + $0x68] sm:$0xff] }
  0x53   : > { %v1302_v27 = vmul.f32 0.125, %v216_v25  ;;  %v1310_v31 = vmul.f32 0.125, %v217_v29  ;;  %v393_v32 = vld [vmem:[%s1244_s5 + $0x78] sm:$0xff]  ;;  %v392_v33 = vld [vmem:[%s1244_s5 + $0x70] sm:$0xff]  ;;  %v390_v35 = vld [vmem:[%s1244_s5 + $0x60] sm:$0xff]  ;;  %s556_s24 = scalar_lea.sflag [#allocation4], %s1229_s16 }
  0x54   : > { %250 = vmax.xlane.f32.xlu0 %v1260_v6  ;;  %252 = vmax.xlane.f32.xlu1 %v1262_v7  ;;  %v389_v36 = vld [vmem:[%s1244_s5 + $0x58] sm:$0xff]  ;;  %v388_v37 = vld [vmem:[%s1244_s5 + $0x50] sm:$0xff]  ;;  %v387_v24 = vld [vmem:[%s1244_s5 + $0x48] sm:$0xff]  ;;  %s981_s13 = scalar_lea.vmem %s1434_s14, 2048  ;;  %p1491_p1 = scmp.ne.s32.totalorder %s1486_s21, 0 }
  0x55   : > { %718 = vmatprep.subr.mxu0 %v393_v32  ;;  %774 = vmatprep.subr.mxu1 %v393_v32  ;;  %p982_p13 = scmp.ne.s32.totalorder %s1434_s14, %s981_s13  ;;  %s1055_s26 = smov [#allocation7]  }
  0x56   : > { %719 = vmatpush3.msra.mxu0 %v393_v32  ;;  %790 = vmatpush3.msra.mxu1 %v393_v32  ;;  %s985_s27 = sshll.u32 %s1055_s26, 4  ;;  %s986_s27 = int_to_ptr.vmem [resolvable:$false] %s985_s27 }
  0x57   : > { %720 = vmatprep.subr.mxu0 %v392_v33  ;;  %775 = vmatprep.subr.mxu1 %v392_v33  ;;  %p983_p12 = pnand %p982_p13, %p1491_p1  ;;  %s987_s23 = scalar_lea.vmem %s986_s27, 4096 }
  0x58   : > { %238 = vmax.xlane.f32.xlu0 %v1268_v10  ;;  %254 = vmax.xlane.f32.xlu1 %v1270_v11  ;;  %p988_p10 = scmp.lt.s32.totalorder %s1434_s14, %s986_s27  ;;  %p989_p0 = scmp.lt.s32.totalorder %s987_s23, %s981_s13 }
  0x59   : > { %721 = vmatpush3.msra.mxu0 %v392_v33  ;;  %791 = vmatpush3.msra.mxu1 %v392_v33  ;;  %p984_p7 = pneg %p983_p12 }
  0x5a   : > { %722 = vmatprep.subr.mxu0 %v391_v34  ;;  %776 = vmatprep.subr.mxu1 %v391_v34  ;;  %p990_p2 = por %p989_p0, %p988_p10 }
  0x5b   : > { %723 = vmatpush3.msra.mxu0 %v391_v34  ;;  %792 = vmatpush3.msra.mxu1 %v391_v34  ;;  %v384_v34 = vld [vmem:[%s1244_s5 + $0x30] sm:$0xff] }
  0x5c   : > { %240 = vmax.xlane.f32.xlu0 %v1276_v14  ;;  %256 = vmax.xlane.f32.xlu1 %v1278_v15  ;;  %p991_p4 = pnand %p990_p2, %p984_p7 }
  0x5d   : > { %724 = vmatprep.subr.mxu0 %v390_v35  ;;  %777 = vmatprep.subr.mxu1 %v390_v35 }
  0x5e   : > { %725 = vmatpush3.msra.mxu0 %v390_v35  ;;  %793 = vmatpush3.msra.mxu1 %v390_v35 }
  0x5f   : > { %726 = vmatprep.subr.mxu0 %v389_v36  ;;  %778 = vmatprep.subr.mxu1 %v389_v36 }
  0x60   : > { %242 = vmax.xlane.f32.xlu0 %v1284_v18  ;;  %258 = vmax.xlane.f32.xlu1 %v1286_v19 }
  0x61   : > { %727 = vmatpush3.msra.mxu0 %v389_v36  ;;  %794 = vmatpush3.msra.mxu1 %v389_v36  ;;  %v383_v36 = vld [vmem:[%s1244_s5 + $0x28] sm:$0xff] }
  0x62   : > { %728 = vmatprep.subr.mxu0 %v388_v37  ;;  %779 = vmatprep.subr.mxu1 %v388_v37 }
  0x63   : > { %729 = vmatpush3.msra.mxu0 %v388_v37  ;;  %795 = vmatpush3.msra.mxu1 %v388_v37 }
  0x64   : > { %244 = vmax.xlane.f32.xlu0 %v1292_v22  ;;  %260 = vmax.xlane.f32.xlu1 %v1294_v23 }
  0x65   : > { %730 = vmatprep.subr.mxu0 %v387_v24  ;;  %780 = vmatprep.subr.mxu1 %v387_v24 }
  0x66   : > { %731 = vmatpush3.msra.mxu0 %v387_v24  ;;  %796 = vmatpush3.msra.mxu1 %v387_v24 }
  0x68   : > { %246 = vmax.xlane.f32.xlu0 %v1300_v26  ;;  %262 = vmax.xlane.f32.xlu1 %v1302_v27 }
  0x6c   : > { %248 = vmax.xlane.f32.xlu0 %v1308_v30  ;;  %264 = vmax.xlane.f32.xlu1 %v1310_v31 }
  0xd9   : > { %v235_v38 = vpop.xlane.xlu0 %234  ;;  %v237_v39 = vpop.xlane.xlu1 %236 }
  0xda   : > { %v266_v40 = vsub.f32 %v1253_v3, %v235_v38  ;;  %v267_v41 = vsub.f32 %v1255_v4, %v237_v39  ;;  %v382_v38 = vld [vmem:[%s1244_s5 + $0x20] sm:$0xff] }
  0xdc   : > { %v282_v42 = vmul.f32 1.442695, %v266_v40  ;;  %v284_v43 = vmul.f32 1.442695, %v267_v41  ;;  %v381_v41 = vld [vmem:[%s1244_s5 + $0x18] sm:$0xff] }
  0xdd   : > { %v251_v44 = vpop.xlane.xlu0 %250  ;;  %v253_v45 = vpop.xlane.xlu1 %252 }
  0xde   : > { %861 = vpow2.f32 %v282_v42  ;;  %v274_v46 = vsub.f32 %v1260_v6, %v251_v44  ;;  %v275_v47 = vsub.f32 %v1262_v7, %v253_v45  ;;  %v379_v45 = vld [vmem:[%s1244_s5 + $0x8] sm:$0xff] }
  0xdf   : > { %863 = vpow2.f32 %v284_v43  ;;  %v380_v43 = vld [vmem:[%s1244_s5 + $0x10] sm:$0xff] }
  0xe0   : > { %v298_v48 = vmul.f32 1.442695, %v274_v46  ;;  %v300_v49 = vmul.f32 1.442695, %v275_v47  ;;  %v378_v47 = vld [vmem:[%s1244_s5] sm:$0xff] }
  0xe1   : > { %v239_v50 = vpop.xlane.xlu0 %238  ;;  %v255_v51 = vpop.xlane.xlu1 %254 }
  0xe2   : > { %865 = vpow2.f32 %v298_v48  ;;  %v268_v52 = vsub.f32 %v1268_v10, %v239_v50  ;;  %v276_v53 = vsub.f32 %v1270_v11, %v255_v51 }
  0xe3   : > { %867 = vpow2.f32 %v300_v49 }
  0xe4   : > { %v286_v54 = vmul.f32 1.442695, %v268_v52  ;;  %v302_v55 = vmul.f32 1.442695, %v276_v53 }
  0xe5   : > { %v241_v56 = vpop.xlane.xlu0 %240  ;;  %v257_v57 = vpop.xlane.xlu1 %256 }
  0xe6   : > { %869 = vpow2.f32 %v286_v54  ;;  %v269_v58 = vsub.f32 %v1276_v14, %v241_v56  ;;  %v277_v59 = vsub.f32 %v1278_v15, %v257_v57 }
  0xe7   : > { %871 = vpow2.f32 %v302_v55 }
  0xe8   : > { %v288_v60 = vmul.f32 1.442695, %v269_v58  ;;  %v304_v61 = vmul.f32 1.442695, %v277_v59 }
  0xe9   : > { %v243_v62 = vpop.xlane.xlu0 %242  ;;  %v259_v63 = vpop.xlane.xlu1 %258 }
  0xea   : > { %873 = vpow2.f32 %v288_v60  ;;  %v270_v0 = vsub.f32 %v1284_v18, %v243_v62  ;;  %v278_v1 = vsub.f32 %v1286_v19, %v259_v63 }
  0xeb   : > { %v1330_v2 = vpop.eup %861  ;;  %875 = vpow2.f32 %v304_v61 }
  0xec   : > { %v290_v3 = vmul.f32 1.442695, %v270_v0  ;;  %314 = vadd.xlane.f32.xlu0 %v1330_v2  ;;  %v306_v4 = vmul.f32 1.442695, %v278_v1  ;;  %v1333_v5 = vpop.eup %863 }
  0xed   : > { %v245_v6 = vpop.xlane.xlu0 %244  ;;  %v261_v7 = vpop.xlane.xlu1 %260 }
  0xee   : > { %877 = vpow2.f32 %v290_v3  ;;  %v271_v8 = vsub.f32 %v1292_v22, %v245_v6  ;;  %v279_v9 = vsub.f32 %v1294_v23, %v261_v7 }
  0xef   : > { %v1337_v10 = vpop.eup %865  ;;  %879 = vpow2.f32 %v306_v4 }
  0xf0   : > { %v292_v11 = vmul.f32 1.442695, %v271_v8  ;;  %316 = vadd.xlane.f32.xlu0 %v1333_v5  ;;  %330 = vadd.xlane.f32.xlu1 %v1337_v10  ;;  %v308_v12 = vmul.f32 1.442695, %v279_v9  ;;  %v1341_v13 = vpop.eup %867 }
  0xf1   : > { %v247_v14 = vpop.xlane.xlu0 %246  ;;  %v263_v15 = vpop.xlane.xlu1 %262 }
  0xf2   : > { %881 = vpow2.f32 %v292_v11  ;;  %v272_v16 = vsub.f32 %v1300_v26, %v247_v14  ;;  %v280_v17 = vsub.f32 %v1302_v27, %v263_v15  ;;  %v386_v27 = vld [vmem:[%s1244_s5 + $0x40] sm:$0xff] }
  0xf3   : > { %v1345_v18 = vpop.eup %869  ;;  %883 = vpow2.f32 %v308_v12  ;;  %732 = vmatprep.subr.mxu0 %v386_v27  ;;  %781 = vmatprep.subr.mxu1 %v386_v27 }
  0xf4   : > { %v294_v19 = vmul.f32 1.442695, %v272_v16  ;;  %332 = vadd.xlane.f32.xlu1 %v1341_v13  ;;  %318 = vadd.xlane.f32.xlu0 %v1345_v18  ;;  %v310_v20 = vmul.f32 1.442695, %v280_v17  ;;  %v1349_v21 = vpop.eup %871 }
  0xf5   : > { %v249_v22 = vpop.xlane.xlu0 %248  ;;  %v265_v23 = vpop.xlane.xlu1 %264  ;;  %733 = vmatpush3.msra.mxu0 %v386_v27  ;;  %797 = vmatpush3.msra.mxu1 %v386_v27 }
  0xf6   : > { %885 = vpow2.f32 %v294_v19  ;;  %v273_v25 = vsub.f32 %v1308_v30, %v249_v22  ;;  %v281_v26 = vsub.f32 %v1310_v31, %v265_v23  ;;  %v385_v30 = vld [vmem:[%s1244_s5 + $0x38] sm:$0xff] }
  0xf7   : > { %v1355_v28 = vpop.eup %873  ;;  %887 = vpow2.f32 %v310_v20  ;;  %734 = vmatprep.subr.mxu0 %v385_v30  ;;  %782 = vmatprep.subr.mxu1 %v385_v30 }
  0xf8   : > { %v296_v29 = vmul.f32 1.442695, %v273_v25  ;;  %334 = vadd.xlane.f32.xlu1 %v1349_v21  ;;  %320 = vadd.xlane.f32.xlu0 %v1355_v28  ;;  %v312_v32 = vmul.f32 1.442695, %v281_v26  ;;  %v1359_v33 = vpop.eup %875 }
  0xf9   : > { %735 = vmatpush3.msra.mxu0 %v385_v30  ;;  %798 = vmatpush3.msra.mxu1 %v385_v30 }
  0xfa   : > { %889 = vpow2.f32 %v296_v29  ;;  %736 = vmatprep.subr.mxu0 %v384_v34  ;;  %783 = vmatprep.subr.mxu1 %v384_v34 }
  0xfb   : > { %v1362_v31 = vpop.eup %877  ;;  %891 = vpow2.f32 %v312_v32  ;;  %737 = vmatpush3.msra.mxu0 %v384_v34  ;;  %799 = vmatpush3.msra.mxu1 %v384_v34 }
  0xfc   : > { %336 = vadd.xlane.f32.xlu1 %v1359_v33  ;;  %322 = vadd.xlane.f32.xlu0 %v1362_v31  ;;  %v1367_v35 = vpop.eup %879 }
  0xfd   : > { %738 = vmatprep.subr.mxu0 %v383_v36  ;;  %784 = vmatprep.subr.mxu1 %v383_v36 }
  0xfe   : > { %739 = vmatpush3.msra.mxu0 %v383_v36  ;;  %800 = vmatpush3.msra.mxu1 %v383_v36 }
  0xff   : > { %v1370_v37 = vpop.eup %881  ;;  %740 = vmatprep.subr.mxu0 %v382_v38  ;;  %785 = vmatprep.subr.mxu1 %v382_v38 }
 0x100   : > { %338 = vadd.xlane.f32.xlu1 %v1367_v35  ;;  %324 = vadd.xlane.f32.xlu0 %v1370_v37  ;;  %v1375_v39 = vpop.eup %883 }
 0x101   : > { %741 = vmatpush3.msra.mxu0 %v382_v38  ;;  %801 = vmatpush3.msra.mxu1 %v382_v38 }
 0x102   : > { %742 = vmatprep.subr.mxu0 %v381_v41  ;;  %786 = vmatprep.subr.mxu1 %v381_v41 }
 0x103   : > { %v1377_v40 = vpop.eup %885  ;;  %743 = vmatpush3.msra.mxu0 %v381_v41  ;;  %802 = vmatpush3.msra.mxu1 %v381_v41 }
 0x104   : > { %340 = vadd.xlane.f32.xlu1 %v1375_v39  ;;  %326 = vadd.xlane.f32.xlu0 %v1377_v40  ;;  %v1382_v42 = vpop.eup %887 }
 0x105   : > { %744 = vmatprep.subr.mxu0 %v380_v43  ;;  %787 = vmatprep.subr.mxu1 %v380_v43 }
 0x106   : > { %745 = vmatpush3.msra.mxu0 %v380_v43  ;;  %803 = vmatpush3.msra.mxu1 %v380_v43 }
 0x107   : > { %v1385_v44 = vpop.eup %889  ;;  %746 = vmatprep.subr.mxu0 %v379_v45  ;;  %788 = vmatprep.subr.mxu1 %v379_v45 }
 0x108   : > { %342 = vadd.xlane.f32.xlu1 %v1382_v42  ;;  %328 = vadd.xlane.f32.xlu0 %v1385_v44  ;;  %v1390_v46 = vpop.eup %891 }
 0x109   : > { %747 = vmatpush3.msra.mxu0 %v379_v45  ;;  %804 = vmatpush3.msra.mxu1 %v379_v45 }
 0x10a   : > { %748 = vmatprep.subr.mxu0 %v378_v47  ;;  %789 = vmatprep.subr.mxu1 %v378_v47 }
 0x10b   : > { %749 = vmatpush3.msra.mxu0 %v378_v47  ;;  %805 = vmatpush3.msra.mxu1 %v378_v47 }
 0x10c   : > { %344 = vadd.xlane.f32.xlu1 %v1390_v46 }
 0x175   : > { %v315_v48 = vpop.xlane.xlu0 %314 }
 0x176   : > { %893 = vrcp.f32 %v315_v48 }
 0x179   : > { %v331_v49 = vpop.xlane.xlu1 %330  ;;  %v317_v50 = vpop.xlane.xlu0 %316 }
 0x17a   : > { %895 = vrcp.f32 %v331_v49 }
 0x17b   : > { %897 = vrcp.f32 %v317_v50 }
 0x17d   : > { %v333_v51 = vpop.xlane.xlu1 %332  ;;  %v319_v52 = vpop.xlane.xlu0 %318 }
 0x17e   : > { %899 = vrcp.f32 %v333_v51 }
 0x17f   : > { %901 = vrcp.f32 %v319_v52 }
 0x181   : > { %v335_v53 = vpop.xlane.xlu1 %334  ;;  %v321_v54 = vpop.xlane.xlu0 %320 }
 0x182   : > { %903 = vrcp.f32 %v335_v53 }
 0x183   : > { %v894_v55 = vpop.eup %893  ;;  %905 = vrcp.f32 %v321_v54 }
 0x184   : > { %v362_v56 = vmul.f32 %v894_v55, %v1330_v2 }
 0x185   : > { %v337_v57 = vpop.xlane.xlu1 %336  ;;  %v323_v58 = vpop.xlane.xlu0 %322 }
 0x186   : > { %907 = vrcp.f32 %v337_v57  ;;  %750 = vmatprep.mubr.f32.mxu0 %v362_v56 }
 0x187   : > { %v896_v59 = vpop.eup %895  ;;  %909 = vrcp.f32 %v323_v58 }
 0x188   : > { %v898_v60 = vpop.eup %897  ;;  %v370_v61 = vmul.f32 %v896_v59, %v1337_v10 }
 0x189   : > { %v339_v62 = vpop.xlane.xlu1 %338  ;;  %v325_v63 = vpop.xlane.xlu0 %324  ;;  %v363_v0 = vmul.f32 %v898_v60, %v1333_v5 }
 0x18a   : > { %911 = vrcp.f32 %v339_v62  ;;  %762 = vmatprep.mubr.f32.mxu1 %v370_v61 }
 0x18b   : > { %v900_v1 = vpop.eup %899  ;;  %913 = vrcp.f32 %v325_v63  ;;  %751 = vmatmul.mubr.f32.vlgmr.msra.gmra.mxu0 %v363_v0 }
 0x18c   : > { %v902_v3 = vpop.eup %901  ;;  %v371_v2 = vmul.f32 %v900_v1, %v1341_v13 }
 0x18d   : > { %v341_v4 = vpop.xlane.xlu1 %340  ;;  %v327_v6 = vpop.xlane.xlu0 %326  ;;  %v364_v7 = vmul.f32 %v902_v3, %v1345_v18 }
 0x18e   : > { %915 = vrcp.f32 %v341_v4  ;;  %763 = vmatmul.mubr.f32.vlgmr.msra.gmra.mxu1 %v371_v2 }
 0x18f   : > { %v904_v8 = vpop.eup %903  ;;  %917 = vrcp.f32 %v327_v6  ;;  %753 = vmatprep.mubr.f32.mxu0 %v364_v7 }
 0x190   : > { %v906_v9 = vpop.eup %905  ;;  %v372_v5 = vmul.f32 %v904_v8, %v1349_v21 }
 0x191   : > { %v343_v10 = vpop.xlane.xlu1 %342  ;;  %v329_v11 = vpop.xlane.xlu0 %328  ;;  %v365_v12 = vmul.f32 %v906_v9, %v1355_v28 }
 0x192   : > { %919 = vrcp.f32 %v343_v10  ;;  %765 = vmatprep.mubr.f32.mxu1 %v372_v5 }
 0x193   : > { %v908_v14 = vpop.eup %907  ;;  %921 = vrcp.f32 %v329_v11  ;;  %754 = vmatmul.mubr.f32.gmra.mxu0 %v365_v12 }
 0x194   : > { %v910_v13 = vpop.eup %909  ;;  %v373_v15 = vmul.f32 %v908_v14, %v1359_v33 }
 0x195   : > { %v345_v16 = vpop.xlane.xlu1 %344  ;;  %v366_v17 = vmul.f32 %v910_v13, %v1362_v31 }
 0x196   : > { %923 = vrcp.f32 %v345_v16  ;;  %766 = vmatmul.mubr.f32.gmra.mxu1 %v373_v15 }
 0x197   : > { %v912_v18 = vpop.eup %911  ;;  %756 = vmatprep.mubr.f32.mxu0 %v366_v17 }
 0x198   : > { %v914_v19 = vpop.eup %913  ;;  %v374_v20 = vmul.f32 %v912_v18, %v1367_v35 }
 0x199   : > { %v367_v21 = vmul.f32 %v914_v19, %v1370_v37 }
 0x19a   : > { %768 = vmatprep.mubr.f32.mxu1 %v374_v20 }
 0x19b   : > { %v916_v22 = vpop.eup %915  ;;  %757 = vmatmul.mubr.f32.gmra.mxu0 %v367_v21 }
 0x19c   : > { %v918_v23 = vpop.eup %917  ;;  %v375_v24 = vmul.f32 %v916_v22, %v1375_v39 }
 0x19d   : > { %v368_v25 = vmul.f32 %v918_v23, %v1377_v40 }
 0x19e   : > { %769 = vmatmul.mubr.f32.gmra.mxu1 %v375_v24 }
 0x19f   : > { %v920_v26 = vpop.eup %919  ;;  %759 = vmatprep.mubr.f32.mxu0 %v368_v25 }
 0x1a0   : > { %v922_v27 = vpop.eup %921  ;;  %v376_v28 = vmul.f32 %v920_v26, %v1382_v42 }
 0x1a1   : > { %v369_v29 = vmul.f32 %v922_v27, %v1385_v44 }
 0x1a2   : > { %771 = vmatprep.mubr.f32.mxu1 %v376_v28 }
 0x1a3   : > { %v924_v32 = vpop.eup %923  ;;  %760 = vmatmul.mubr.f32.gmra.mxu0 %v369_v29 }
 0x1a4   : > { %v377_v33 = vmul.f32 %v924_v32, %v1390_v46 }
 0x1a6   : > { %772 = vmatmul.mubr.f32.gmra.mxu1 %v377_v33 }
 0x24b   : > { %v752_v30 = vpop.f32.mrf.mxu0 }
 0x24c   : > { %540 = vst [vmem:[%s1411_s20 + $0x8] sm:$0xff] %v752_v30 }
 0x24d   : > { %v460_v31 = vpop.f32.mrf.mxu0 }
 0x24e   : > { %539 = vst [vmem:[%s1411_s20] sm:$0xff] %v460_v31  ;;  %v764_v34 = vpop.f32.mrf.mxu1 }
 0x24f   : > { %548 = vst [vmem:[%s1411_s20 + $0x48] sm:$0xff] %v764_v34 }
 0x250   : > { %v500_v35 = vpop.f32.mrf.mxu1 }
 0x251   : > { %547 = vst [vmem:[%s1411_s20 + $0x40] sm:$0xff] %v500_v35 }
 0x253   : > { %v755_v36 = vpop.f32.mrf.mxu0 }
 0x254   : > { %542 = vst [vmem:[%s1411_s20 + $0x18] sm:$0xff] %v755_v36 }
 0x255   : > { %v470_v37 = vpop.f32.mrf.mxu0 }
 0x256   : > { %541 = vst [vmem:[%s1411_s20 + $0x10] sm:$0xff] %v470_v37  ;;  %v767_v38 = vpop.f32.mrf.mxu1 }
 0x257   : > { %550 = vst [vmem:[%s1411_s20 + $0x58] sm:$0xff] %v767_v38 }
 0x258   : > { %v510_v39 = vpop.f32.mrf.mxu1 }
 0x259   : > { %549 = vst [vmem:[%s1411_s20 + $0x50] sm:$0xff] %v510_v39 }
 0x25b   : > { %v758_v40 = vpop.f32.mrf.mxu0 }
 0x25c   : > { %544 = vst [vmem:[%s1411_s20 + $0x28] sm:$0xff] %v758_v40 }
 0x25d   : > { %v480_v41 = vpop.f32.mrf.mxu0 }
 0x25e   : > { %543 = vst [vmem:[%s1411_s20 + $0x20] sm:$0xff] %v480_v41  ;;  %v770_v42 = vpop.f32.mrf.mxu1 }
 0x25f   : > { %552 = vst [vmem:[%s1411_s20 + $0x68] sm:$0xff] %v770_v42 }
 0x260   : > { %v520_v43 = vpop.f32.mrf.mxu1 }
 0x261   : > { %551 = vst [vmem:[%s1411_s20 + $0x60] sm:$0xff] %v520_v43 }
 0x263   : > { %v761_v44 = vpop.f32.mrf.mxu0 }
 0x264   : > { %546 = vst [vmem:[%s1411_s20 + $0x38] sm:$0xff] %v761_v44 }
 0x265   : > { %v490_v45 = vpop.f32.mrf.mxu0 }
 0x266   : > { %545 = vst [vmem:[%s1411_s20 + $0x30] sm:$0xff] %v490_v45  ;;  %v773_v46 = vpop.f32.mrf.mxu1 }
 0x267   : > { %554 = vst [vmem:[%s1411_s20 + $0x78] sm:$0xff] %v773_v46 }
 0x268   : > { %v530_v47 = vpop.f32.mrf.mxu1 }
 0x269   : > { %553 = vst [vmem:[%s1411_s20 + $0x70] sm:$0xff] %v530_v47 }
 0x26a   : > { %994 = shalt.err (!%p991_p4)
}
 0x26b   : > { %s995_s25 = scalar_lea.hbm %s1432_s19, 2048  ;;  %s999_s30 = scalar_lea.hbm %s1481_s2, 4096 }
 0x26c   : > { %p996_p9 = scmp.ne.s32.totalorder %s1432_s19, %s995_s25  ;;  %p1000_p5 = scmp.lt.s32.totalorder %s1432_s19, %s1481_s2 }
 0x26d   : > { %p1001_p8 = scmp.lt.s32.totalorder %s999_s30, %s995_s25 }
 0x26e   : > { %p997_p11 = pnand %p996_p9, %p1491_p1 }
 0x26f   : > { %p1002_p6 = por %p1001_p8, %p1000_p5 }
 0x270   : > { %p998_p3 = pneg %p997_p11 }
 0x272   : > { %p1003_p13 = pnand %p1002_p6, %p998_p3 }
 0x274   : > { %1006 = shalt.err (!%p1003_p13)
}
 0x275   : > { %s1056_s29 = smov 128   ;;  %s1057_s5 = smov 8  }
 0x276   : > { %810 = dma.vmem_to_hbm [thread:$0]  (%p1491_p1), %s1434_s14, 2048, %s1432_s19, %s556_s24, %s1056_s29, %s1056_s29, %s1057_s5  }
 0x277 PF: > { %s584_s20 = sand.u32 1, %s1037_s9   ;;  %p1492_p12 = scmp.ne.s32.totalorder %s1487_s22, 0 }
 0x278   : > { %p1493_p7 = scmp.ge.s32.totalorder %s1049_s12, 2  ;;  %s585_s6 = scalar_lea.sflag [#allocation4], %s584_s20 }
 0x27a   : > { %p820_p10 = pnand %p1493_p7, %p1492_p12 }
 0x27c   : > { %p821_p0 = pneg %p820_p10 }
 0x27e   : > { %1032 = dma.done.wait (%p821_p0), %s585_s6, 2048  }
 0x27f   : > { %1034 = vsyncadd (%p821_p0), %s585_s6, 4294965248  ;;  %p18_p2 = scmp.ge.s32.totalorder %s1098_s15, 4   ;;  %s1494_s9 = smov %s1041_s10 }
 0x280   : > { %s1495_s10 = smov %s1045_s11  ;;  %s1496_s11 = smov %s1110_s18 }
 0x281   : > { %s1497_s12 = smov %s1098_s15  ;;  %20 = sbr.rel (!%p18_p2) target bundleno = 7 (0x7), region = 86 }
 0x286   :  { %590 = vsyncpa [#allocation3], 1 }
 0x287   :  { %592 = vsyncpa [#allocation3 + $0x1], 1 }
 0x288   :  { %593 = vsyncpa [#allocation6], 1 }
 0x289   :  { %595 = vsyncpa [#allocation6 + $0x1], 1 }
 0x28a   :  { %596 = vsyncpa [#allocation4], 1 }
 0x28b   :  { %598 = vsyncpa [#allocation4 + $0x1], 1 }

</bundles_post_ra>
